<compile_context>
chip_gen: v5e
topology: v5e:2x2
jax: 0.10.0
libtpu: 0.0.40
codegen_flags: <defaults>
</compile_context>

<pallas_src>
import math
import functools

import jax
import jax.numpy as jnp
from jax.experimental import pallas as pl
from jax.experimental.pallas import tpu as pltpu


def _posenc_kernel(x_ref, o_ref, *, freqs, include_input, d):
    """Dense scale (VPU) + one lane-dense sin + one lane-dense cos (EUP),
    then a single in-register lane assembly and one full-width store."""
    x = x_ref[...]
    xf32 = x.astype(jnp.float32)  # f32 transcendental arguments on all chips

    parts = []
    if include_input:
        parts.append(xf32)

    # Dense (rows, F*d) argument tile.  freqs are static Python floats ->
    # splat constants; each x*f multiply is bit-identical to the reference.
    z = jnp.concatenate([xf32 * f for f in freqs], axis=-1)
    s = jnp.sin(z)  # one lane-dense EUP pass for all F sin slots
    c = jnp.cos(z)  # one lane-dense EUP pass for all F cos slots
    for k in range(len(freqs)):
        parts.append(s[:, k * d:(k + 1) * d])
        parts.append(c[:, k * d:(k + 1) * d])

    # Single lane-dense store: assembly happens in registers, not via 2F+1
    # masked sub-128 stores at lane offsets.
    o_ref[...] = jnp.concatenate(parts, axis=-1).astype(o_ref.dtype)


def positional_encoding(x, num_freqs=10, include_input=True, row_tile=1024):
    """NeRF positional encoding along the last axis of x (Pallas TPU)."""
    orig_shape = x.shape
    d = orig_shape[-1]
    out_mult = (1 if include_input else 0) + 2 * num_freqs

    # Degenerate configurations.
    if out_mult == 0:
        return jnp.zeros((*orig_shape[:-1], 0), dtype=x.dtype)
    if num_freqs == 0:
        return x  # cat([x], dim=-1) == x

    freqs = tuple((2.0 ** k) * math.pi for k in range(num_freqs))
    d_out = d * out_mult

    n = 1
    for s_ in orig_shape[:-1]:
        n *= s_
    x2 = x.reshape(n, d)

    itemsize = jnp.dtype(x.dtype).itemsize
    sub = {4: 8, 2: 16, 1: 32}.get(itemsize, 8)  # sublane multiple per dtype

    # --- VMEM budget from actual chip capacity (v7x: 64 MiB / TensorCore) ---
    try:
        vmem_cap = int(pltpu.get_tpu_info().vmem_capacity_bytes)
    except Exception:  # query unavailable -> assume the smallest (v7x) VMEM
        vmem_cap = 64 * 1024 * 1024
    budget = int(vmem_cap * 0.7)

    # Per-row VMEM: double-buffered in/out blocks + f32 temporaries (dense
    # argument tile, sin, cos, assembled output) headroom.
    bytes_per_row = (2 * (d + d_out) * itemsize
                     + (3 * num_freqs * d + 2 * d_out) * 4)
    max_rows = max(sub, (budget // max(bytes_per_row, 1)) // sub * sub)
    row_tile = max(sub, min(row_tile, max_rows))

    # Keep the grid at >= 2 steps so ("parallel",) can use both v7x cores.
    if n > sub:
        half = pl.cdiv(pl.cdiv(n, 2), sub) * sub
        row_tile = min(row_tile, half)
    row_tile = max(sub, pl.cdiv(row_tile, sub) * sub)

    grid = pl.cdiv(n, row_tile)
    # Nudge small odd grids to an even step count (2-TC load balance on v7x).
    if 1 < grid < 16 and grid % 2 == 1:
        row_tile = max(sub, pl.cdiv(pl.cdiv(n, grid + 1), sub) * sub)
        grid = pl.cdiv(n, row_tile)

    kernel = functools.partial(
        _posenc_kernel, freqs=freqs, include_input=include_input, d=d)

    vmem_limit = min(
        max(32 * 1024 * 1024, int(row_tile * bytes_per_row * 1.4)),
        int(vmem_cap * 0.85))

    out = pl.pallas_call(
        kernel,
        out_shape=jax.ShapeDtypeStruct((n, d_out), x.dtype),
        grid_spec=pltpu.PrefetchScalarGridSpec(
            num_scalar_prefetch=0,
            grid=(grid,),
            in_specs=[pl.BlockSpec((row_tile, d), lambda i: (i, 0))],
            out_specs=pl.BlockSpec((row_tile, d_out), lambda i: (i, 0)),
        ),
        compiler_params=pltpu.CompilerParams(
            dimension_semantics=("parallel",),
            vmem_limit_bytes=vmem_limit,
        ),
    )(x2)

    return out.reshape(*orig_shape[:-1], d_out)


def _reference(x, num_freqs=10, include_input=True):
    freqs = (2.0 ** jnp.arange(num_freqs, dtype=jnp.float32)) * jnp.float32(math.pi)
    parts = []
    if include_input:
        parts.append(x)
    for k in range(num_freqs):
        parts.append(jnp.sin(x * freqs[k]).astype(x.dtype))
        parts.append(jnp.cos(x * freqs[k]).astype(x.dtype))
    return jnp.concatenate(parts, axis=-1)


if __name__ == "__main__":
    key = jax.random.PRNGKey(0)
    # batch=2, seq=8, hidden=32 (feature axis last, matching torch's dim=-1 concat)
    x = jax.random.normal(key, (2, 8, 32), dtype=jnp.float32)

    num_freqs = 10
    out = positional_encoding(x, num_freqs=num_freqs, include_input=True)
    out = jax.block_until_ready(out)

    ref = _reference(x, num_freqs=num_freqs, include_input=True)
    assert out.shape == (2, 8, 32 * (1 + 2 * num_freqs)), out.shape
    assert jnp.allclose(out, ref, atol=1e-5, rtol=1e-5), "mismatch vs reference"

    # Larger, non-divisible row count: exercises the clipped (ragged) last
    # block path — no wrapper-side pad and no output re-slice copy.
    x_big = jax.random.normal(jax.random.PRNGKey(1), (3, 700, 32), dtype=jnp.float32)
    out_big = jax.block_until_ready(positional_encoding(x_big, num_freqs=num_freqs))
    ref_big = _reference(x_big, num_freqs=num_freqs)
    assert out_big.shape == (3, 700, 32 * (1 + 2 * num_freqs)), out_big.shape
    assert jnp.allclose(out_big, ref_big, atol=1e-5, rtol=1e-5), "mismatch (big) vs reference"

    print("KERNEL_OK")
</pallas_src>

<mosaic_0001>
module attributes {stable_mosaic.version = 11 : i64} {
  func.func @_posenc_kernel(%arg0: i32, %arg1: memref<8x32xf32, #tpu.memory_space<vmem>>, %arg2: memref<8x672xf32, #tpu.memory_space<vmem>>) attributes {dimension_semantics = [#tpu.dimension_semantics<parallel>], iteration_bounds = array<i64: 2>, scalar_prefetch = 0 : i64, scratch_operands = 0 : i64, tpu.core_type = #tpu.core_type<tc>, window_params = [{transform_indices = @transform_0, window_bounds = array<i64: 8, 32>}, {transform_indices = @transform_1, window_bounds = array<i64: 8, 672>}]} {
    %c0 = arith.constant 0 : index
    %c0_0 = arith.constant 0 : index
    %0 = vector.load %arg1[%c0, %c0_0] : memref<8x32xf32, #tpu.memory_space<vmem>>, vector<8x32xf32>
    %cst = arith.constant 3.14159274 : f32
    %1 = vector.broadcast %cst : f32 to vector<8x32xf32>
    %2 = arith.mulf %0, %1 : vector<8x32xf32>
    %cst_1 = arith.constant 6.28318548 : f32
    %3 = vector.broadcast %cst_1 : f32 to vector<8x32xf32>
    %4 = arith.mulf %0, %3 : vector<8x32xf32>
    %cst_2 = arith.constant 12.566371 : f32
    %5 = vector.broadcast %cst_2 : f32 to vector<8x32xf32>
    %6 = arith.mulf %0, %5 : vector<8x32xf32>
    %cst_3 = arith.constant 25.1327419 : f32
    %7 = vector.broadcast %cst_3 : f32 to vector<8x32xf32>
    %8 = arith.mulf %0, %7 : vector<8x32xf32>
    %cst_4 = arith.constant 50.2654839 : f32
    %9 = vector.broadcast %cst_4 : f32 to vector<8x32xf32>
    %10 = arith.mulf %0, %9 : vector<8x32xf32>
    %cst_5 = arith.constant 100.530968 : f32
    %11 = vector.broadcast %cst_5 : f32 to vector<8x32xf32>
    %12 = arith.mulf %0, %11 : vector<8x32xf32>
    %cst_6 = arith.constant 201.061935 : f32
    %13 = vector.broadcast %cst_6 : f32 to vector<8x32xf32>
    %14 = arith.mulf %0, %13 : vector<8x32xf32>
    %cst_7 = arith.constant 402.123871 : f32
    %15 = vector.broadcast %cst_7 : f32 to vector<8x32xf32>
    %16 = arith.mulf %0, %15 : vector<8x32xf32>
    %cst_8 = arith.constant 804.247741 : f32
    %17 = vector.broadcast %cst_8 : f32 to vector<8x32xf32>
    %18 = arith.mulf %0, %17 : vector<8x32xf32>
    %cst_9 = arith.constant 1608.49548 : f32
    %19 = vector.broadcast %cst_9 : f32 to vector<8x32xf32>
    %20 = arith.mulf %0, %19 : vector<8x32xf32>
    %21 = tpu.concatenate %2, %4, %6, %8, %10, %12, %14, %16, %18, %20 in 1 : vector<8x32xf32>, vector<8x32xf32>, vector<8x32xf32>, vector<8x32xf32>, vector<8x32xf32>, vector<8x32xf32>, vector<8x32xf32>, vector<8x32xf32>, vector<8x32xf32>, vector<8x32xf32> -> vector<8x320xf32>
    %22 = math.sin %21 : vector<8x320xf32>
    %23 = math.cos %21 : vector<8x320xf32>
    %24 = vector.extract_strided_slice %22 {offsets = [0, 0], sizes = [8, 32], strides = [1, 1]} : vector<8x320xf32> to vector<8x32xf32>
    %25 = vector.extract_strided_slice %23 {offsets = [0, 0], sizes = [8, 32], strides = [1, 1]} : vector<8x320xf32> to vector<8x32xf32>
    %26 = vector.extract_strided_slice %22 {offsets = [0, 32], sizes = [8, 32], strides = [1, 1]} : vector<8x320xf32> to vector<8x32xf32>
    %27 = vector.extract_strided_slice %23 {offsets = [0, 32], sizes = [8, 32], strides = [1, 1]} : vector<8x320xf32> to vector<8x32xf32>
    %28 = vector.extract_strided_slice %22 {offsets = [0, 64], sizes = [8, 32], strides = [1, 1]} : vector<8x320xf32> to vector<8x32xf32>
    %29 = vector.extract_strided_slice %23 {offsets = [0, 64], sizes = [8, 32], strides = [1, 1]} : vector<8x320xf32> to vector<8x32xf32>
    %30 = vector.extract_strided_slice %22 {offsets = [0, 96], sizes = [8, 32], strides = [1, 1]} : vector<8x320xf32> to vector<8x32xf32>
    %31 = vector.extract_strided_slice %23 {offsets = [0, 96], sizes = [8, 32], strides = [1, 1]} : vector<8x320xf32> to vector<8x32xf32>
    %32 = vector.extract_strided_slice %22 {offsets = [0, 128], sizes = [8, 32], strides = [1, 1]} : vector<8x320xf32> to vector<8x32xf32>
    %33 = vector.extract_strided_slice %23 {offsets = [0, 128], sizes = [8, 32], strides = [1, 1]} : vector<8x320xf32> to vector<8x32xf32>
    %34 = vector.extract_strided_slice %22 {offsets = [0, 160], sizes = [8, 32], strides = [1, 1]} : vector<8x320xf32> to vector<8x32xf32>
    %35 = vector.extract_strided_slice %23 {offsets = [0, 160], sizes = [8, 32], strides = [1, 1]} : vector<8x320xf32> to vector<8x32xf32>
    %36 = vector.extract_strided_slice %22 {offsets = [0, 192], sizes = [8, 32], strides = [1, 1]} : vector<8x320xf32> to vector<8x32xf32>
    %37 = vector.extract_strided_slice %23 {offsets = [0, 192], sizes = [8, 32], strides = [1, 1]} : vector<8x320xf32> to vector<8x32xf32>
    %38 = vector.extract_strided_slice %22 {offsets = [0, 224], sizes = [8, 32], strides = [1, 1]} : vector<8x320xf32> to vector<8x32xf32>
    %39 = vector.extract_strided_slice %23 {offsets = [0, 224], sizes = [8, 32], strides = [1, 1]} : vector<8x320xf32> to vector<8x32xf32>
    %40 = vector.extract_strided_slice %22 {offsets = [0, 256], sizes = [8, 32], strides = [1, 1]} : vector<8x320xf32> to vector<8x32xf32>
    %41 = vector.extract_strided_slice %23 {offsets = [0, 256], sizes = [8, 32], strides = [1, 1]} : vector<8x320xf32> to vector<8x32xf32>
    %42 = vector.extract_strided_slice %22 {offsets = [0, 288], sizes = [8, 32], strides = [1, 1]} : vector<8x320xf32> to vector<8x32xf32>
    %43 = vector.extract_strided_slice %23 {offsets = [0, 288], sizes = [8, 32], strides = [1, 1]} : vector<8x320xf32> to vector<8x32xf32>
    %44 = tpu.concatenate %0, %24, %25, %26, %27, %28, %29, %30, %31, %32, %33, %34, %35, %36, %37, %38 in 1 : vector<8x32xf32>, vector<8x32xf32>, vector<8x32xf32>, vector<8x32xf32>, vector<8x32xf32>, vector<8x32xf32>, vector<8x32xf32>, vector<8x32xf32>, vector<8x32xf32>, vector<8x32xf32>, vector<8x32xf32>, vector<8x32xf32>, vector<8x32xf32>, vector<8x32xf32>, vector<8x32xf32>, vector<8x32xf32> -> vector<8x512xf32>
    %45 = tpu.concatenate %39, %40, %41, %42, %43 in 1 : vector<8x32xf32>, vector<8x32xf32>, vector<8x32xf32>, vector<8x32xf32>, vector<8x32xf32> -> vector<8x160xf32>
    %46 = tpu.concatenate %44, %45 in 1 : vector<8x512xf32>, vector<8x160xf32> -> vector<8x672xf32>
    %c0_10 = arith.constant 0 : index
    %c0_11 = arith.constant 0 : index
    %47 = vector.load %arg2[%c0_10, %c0_11] : memref<8x672xf32, #tpu.memory_space<vmem>>, vector<8x672xf32>
    tpu.vector_store %arg2[%c0_10, %c0_11], %46 {strides = array<i32>} : memref<8x672xf32, #tpu.memory_space<vmem>>, vector<8x672xf32>,
    return
  }
  func.func @transform_0(%arg0: i32) -> (i32, i32) {
    %c0_i32 = arith.constant 0 : i32
    %c0_i32_0 = arith.constant 0 : i32
    return %arg0, %c0_i32 : i32, i32
  }
  func.func @transform_1(%arg0: i32) -> (i32, i32) {
    %c0_i32 = arith.constant 0 : i32
    %c0_i32_0 = arith.constant 0 : i32
    return %arg0, %c0_i32 : i32, i32
  }
}

</mosaic_0001>

<bundles_post_ra>
// kernel: tpu_custom_call.1
= control target key start
LH: loop header
LB: loop body
LE: loop exit
PB: predicated region body
PF: predicated region fallthrough
CT: control target
= control target key end

     0   :  { %6 = vsyncpa [#allocation3], 0  ;;  %s2005_s0 = inlined_call_operand.hbm [shape: f32[16,32], index: 0, kind: input, shape index: {}]   ;;  %s2006_s1 = inlined_call_operand.hbm [shape: f32[16,672], index: 1, kind: output, shape index: {}]  }
   0x1   :  { %8 = vsyncpa [#allocation3 + $0x1], 0 }
   0x2   :  { %9 = vsyncpa [#allocation4], 0 }
   0x3   :  { %11 = vsyncpa [#allocation4 + $0x1], 0  ;;  %s1477_s6 = smov 0   ;;  %s1479_s7 = smov 0  }
   0x4   :  { %s1481_s8 = smov 0   ;;  %s1483_s9 = smov 0  }
   0x5 LB: > { %s1498_s10 = sadd.s32 4294967295, %s1455_s9   ;;  %s1272_s11 = sadd.s32 4294967294, %s1455_s9   ;;  %s1455_s9 = sphi %s1483_s9, %s2022_s9   ;;  %s1451_s8 = sphi %s1481_s8, %s2021_s8   ;;  %s1447_s7 = sphi %s1479_s7, %s2020_s7   ;;  %s1443_s6 = sphi %s1477_s6, %s2019_s6  }
   0x6   : > { %s1502_s12 = sadd.s32 1, %s1455_s9   ;;  %s24_s13 = sadd.s32 1, %s1451_s8 }
   0x7   : > { %s21_s14 = ssub.s32 %s1455_s9, %s1502_s12  ;;  %p31_p0 = scmp.ne.s32.totalorder %s1451_s8, %s1447_s7 }
   0x8   : > { %p22_p1 = scmp.eq.s32.totalorder %s21_s14, 0  ;;  %p32_p2 = scmp.eq.s32.totalorder %s1455_s9, 0 }
   0x9   : > { %p37_p3 = scmp.ne.s32.totalorder %s1447_s7, %s1443_s6  ;;  %p38_p4 = scmp.eq.s32.totalorder %s1498_s10, 0 }
   0xa   : > { %s1514_s15 = scalar_select %p22_p1, %s1451_s8, %s24_s13  }
   0xb   : > { %p1516_p5 = por %p32_p2, %p31_p0  ;;  %p1520_p6 = por %p38_p4, %p37_p3 }
   0xc   : > { %p61_p7 = scmp.eq.s32.totalorder %s1498_s10, 1  ;;  %p67_p8 = scmp.eq.s32.totalorder %s1272_s11, 1 }
   0xd   : > { %p1314_p10 = scmp.lt.s32.totalorder %s1455_s9, 2  ;;  %s87_s20 = sand.u32 1, %s1451_s8  }
   0xe   : > { %p1527_p11 = por %p61_p7, %p31_p0  ;;  %p1531_p12 = por %p67_p8, %p37_p3 }
   0xf   : > { %s1276_s21 = sshll.u32 %s1455_s9, 3  ;;  %s1275_s22 = sshll.u32 %s87_s20, 3 }
  0x10   : > { %s95_s25 = scalar_lea.hbm %s2005_s0, %s1276_s21  ;;  %s91_s27 = scalar_lea.vmem [#allocation2], %s1275_s22 }
  0x11   : > { %s97_s26 = sshll.u32 %s95_s25, 4  ;;  %s99_s28 = sshll.u32 %s91_s27, 4  ;;  %s98_s26 = int_to_ptr.hbm [resolvable:$true] %s97_s26  ;;  %s100_s28 = int_to_ptr.vmem [resolvable:$true] %s99_s28 }
  0x12   : > { %p1542_p13 = pnand %p1314_p10, %p1516_p5  ;;  %p1277_p0 = scmp.ge.s32.totalorder %s1455_s9, 1 }
  0x13   : > { %p104_p1 = scmp.lt.s32.totalorder %s1455_s9, 3  ;;  %s88_s30 = scalar_lea.sflag [#allocation3], %s87_s20 }
  0x14   : > { %s1359_s2 = sshra.s32 %s98_s26, 4  ;;  %p1363_p3 = pneg %p1542_p13  ;;  %s1360_s2 = int_to_ptr.hbm [resolvable:$true] %s1359_s2 }
  0x15   : > { %s1361_s3 = scalar_lea.hbm %s1360_s2, 8  ;;  %s1366_s11 = scalar_lea.hbm %s2005_s0, 16 }
  0x16   : > { %p1362_p2 = scmp.ne.s32.totalorder %s1360_s2, %s1361_s3  ;;  %p1367_p5 = scmp.lt.s32.totalorder %s1360_s2, %s2005_s0 }
  0x17   : > { %p1368_p8 = scmp.lt.s32.totalorder %s1366_s11, %s1361_s3 }
  0x18   : > { %p1364_p4 = pnand %p1363_p3, %p1362_p2 }
  0x19   : > { %p1369_p10 = por %p1368_p8, %p1367_p5 }
  0x1a   : > { %p1365_p7 = pneg %p1364_p4 }
  0x1c   : > { %p1370_p9 = pnand %p1369_p10, %p1365_p7 }
  0x1e   : > { %1373 = shalt.err (!%p1370_p9)
}
  0x1f   : > { %1309 = dma.hbm_to_vmem [thread:$0]  (!%p1542_p13), %s98_s26, 128, %s100_s28, %s88_s30  }
  0x20   : > { %p105_p2 = pnand %p1277_p0, %p104_p1 }
  0x21   : > { %s1563_s16 = sand.u32 (!%p105_p2), 1, %s1447_s7  }
  0x22   : > { %108 = sbr.rel (%p105_p2) target bundleno = 470 (0x1d6), region = 24  ;;  %s1278_s20 = sshll.u32 (!%p105_p2), %s1563_s16, 3 }
  0x23   : > { %s111_s21 = scalar_lea.sflag (!%p105_p2), [#allocation3], %s1563_s16  ;;  %s1567_s22 = scalar_lea.vmem (!%p105_p2), [#allocation2], %s1278_s20 }
  0x27   : > { %1434 = dma.done.wait (%p1520_p6), %s111_s21, 128  }
  0x28   : > { %1436 = vsyncadd (%p1520_p6), %s111_s21, 4294967168  ;;  %v1574_v0 = vld [vmem:[%s1567_s22] sm:$0xff]  ;;  %s1457_s23 = smov 32   ;;  %s1458_s24 = smov 64   ;;  %vm173_vm0 = vcmask 261120   ;;  %vm175_vm1 = vcmask 523264  }
  0x29   : > { %v136_v1 = vmul.f32 6.2831855, %v1574_v0  ;;  %v137_v2 = vmul.f32 12.566371, %v1574_v0  ;;  %v138_v3 = vmul.f32 25.132742, %v1574_v0 }
  0x2a   : > { %s1459_s25 = smov 96   ;;  %v140_v4 = vmul.f32 100.53097, %v1574_v0  ;;  %v141_v5 = vmul.f32 201.06194, %v1574_v0  ;;  %vm177_vm2 = vcmask 785408  }
  0x2b   : > { %146 = vrot.lane.b32.xlu0 %v136_v1, %s1457_s23  ;;  %150 = vrot.lane.b32.xlu1 %v137_v2, %s1458_s24  ;;  %v142_v6 = vmul.f32 402.12387, %v1574_v0  ;;  %v144_v7 = vmul.f32 1608.4955, %v1574_v0  ;;  %v135_v8 = vmul.f32 3.1415927, %v1574_v0 }
  0x2c   : > { %154 = vrot.lane.b32.xlu2 %v138_v3, %s1459_s25  ;;  %v139_v17 = vmul.f32 50.265484, %v1574_v0  ;;  %v1460_v39 = vmov 683565275   ;;  %v1461_v41 = vmov 2475754826  }
  0x2d   : > { %v1462_v43 = vmov 2131351028   ;;  %v1463_v45 = vmov 2102212464   ;;  %v1464_v50 = vmov 920167782  }
  0x2e   : > { %v1465_v53 = vmov 1326507024   ;;  %s1300_s17 = smul.u32 48, %s1563_s16  ;;  %s1186_s3 = scalar_lea.sflag [#allocation4], %s1563_s16 }
  0x2f   : > { %s1301_s27 = smul.u32 48, %s1498_s10  ;;  %s1409_s14 = scalar_lea.hbm %s2006_s1, 96 }
  0x30   : > { %s133_s26 = scalar_lea.vmem [#allocation5], %s1300_s17 }
  0x31   : > { %s1197_s30 = scalar_lea.hbm %s2006_s1, %s1301_s27  ;;  %s1199_s2 = sshll.u32 %s133_s26, 4  ;;  %s1200_s2 = int_to_ptr.vmem [resolvable:$true] %s1199_s2 }
  0x32   : > { %s1201_s10 = sshll.u32 %s1197_s30, 4  ;;  %s1202_s10 = int_to_ptr.hbm [resolvable:$true] %s1201_s10 }
  0x33   : > { %158 = vrot.lane.b32.xlu0 %v140_v4, %s1457_s23  ;;  %162 = vrot.lane.b32.xlu1 %v141_v5, %s1458_s24  ;;  %s1403_s4 = sshra.s32 %s1202_s10, 4  ;;  %s1404_s4 = int_to_ptr.hbm [resolvable:$true] %s1403_s4 }
  0x34   : > { %166 = vrot.lane.b32.xlu2 %v142_v6, %s1459_s25  ;;  %s1405_s5 = scalar_lea.hbm %s1404_s4, 48  ;;  %p1410_p0 = scmp.lt.s32.totalorder %s1404_s4, %s2006_s1 }
  0x35   : > { %p1406_p6 = scmp.ne.s32.totalorder %s1404_s4, %s1405_s5  ;;  %p1411_p1 = scmp.lt.s32.totalorder %s1409_s14, %s1405_s5 }
  0x37   : > { %p1407_p9 = pnand %p1406_p6, %p1527_p11  ;;  %p1412_p3 = por %p1411_p1, %p1410_p0 }
  0x39   : > { %p1408_p13 = pneg %p1407_p9 }
  0x3b   : > { %170 = vrot.lane.b32.xlu0 %v144_v7, %s1457_s23  ;;  %p1413_p4 = pnand %p1412_p3, %p1408_p13 }
  0x86   : > { %v155_v9 = vpop.permute.xlu2 %154 }
  0x8e   : > { %v167_v20 = vpop.permute.xlu2 %166 }
  0x9d   : > { %v147_v10 = vpop.permute.xlu0 %146  ;;  %v151_v11 = vpop.permute.xlu1 %150 }
  0x9e   : > { %v174_v12 = vsel %vm173_vm0, %v135_v8, %v147_v10 }
  0x9f   : > { %v176_v13 = vsel %vm175_vm1, %v174_v12, %v151_v11 }
  0xa0   : > { %v1594_v14 = vsel %vm177_vm2, %v176_v13, %v155_v9 }
  0xa1   : > { %v183_v15 = vand.u32 2147483647, %v1594_v14  ;;  %v186_v16 = vand.u32 2139095040, %v1594_v14 }
  0xa3   : > { %v187_v18 = vshrl.u32 %v186_v16, 23  ;;  %v190_v19 = vand.u32 8388607, %v183_v15 }
  0xa5   : > { %v1279_v21 = vadd.s32 4294967169, %v187_v18  ;;  %v191_v22 = vor.u32 8388608, %v190_v19  ;;  %v159_v23 = vpop.permute.xlu0 %158  ;;  %v163_v24 = vpop.permute.xlu1 %162 }
  0xa6   : > { %v179_v25 = vsel %vm173_vm0, %v139_v17, %v159_v23 }
  0xa7   : > { %v193_v26 = vadd.s32 1, %v1279_v21  ;;  %v180_v27 = vsel %vm175_vm1, %v179_v25, %v163_v24  ;;  %v1606_v29 = vshll.u32 %v191_v22, 8 }
  0xa8   : > { %v1604_v28 = vsel %vm177_vm2, %v180_v27, %v167_v20 }
  0xa9   : > { %vm194_vm3 = vcmp.gt.s32.totalorder %v193_v26, 0  ;;  %v338_v30 = vand.u32 2147483647, %v1604_v28  ;;  %v341_v32 = vand.u32 2139095040, %v1604_v28  ;;  %v232_v36 = vand.u32 65535, %v1606_v29 }
  0xaa   : > { %v195_v31 = vsel %vm194_vm3, %v193_v26, 0  ;;  %v233_v12 = vshrl.u32 %v1606_v29, 16 }
  0xab   : > { %v197_v33 = vand.u32 31, %v195_v31  ;;  %v196_v34 = vshrl.u32 %v195_v31, 5  ;;  %v342_v37 = vshrl.u32 %v341_v32, 23  ;;  %v345_v38 = vand.u32 8388607, %v338_v30 }
  0xad   : > { %v198_v35 = vsub.s32 32, %v197_v33  ;;  %v200_v40 = vshll.u32 %v1460_v39, %v197_v33  ;;  %v203_v42 = vshll.u32 %v1461_v41, %v197_v33  ;;  %v206_v44 = vshll.u32 %v1462_v43, %v197_v33 }
  0xae   : > { %v209_v46 = vshll.u32 %v1463_v45, %v197_v33  ;;  %v212_v51 = vshll.u32 %v1464_v50, %v197_v33  ;;  %vm215_vm4 = vcmp.lt.s32.totalorder %v196_v34, 1  ;;  %vm216_vm5 = vcmp.lt.s32.totalorder %v196_v34, 2 }
  0xaf   : > { %v201_v47 = vshrl.u32 %v1461_v41, %v198_v35  ;;  %v204_v48 = vshrl.u32 %v1462_v43, %v198_v35  ;;  %v207_v49 = vshrl.u32 %v1463_v45, %v198_v35  ;;  %v210_v52 = vshrl.u32 %v1464_v50, %v198_v35 }
  0xb0   : > { %v213_v54 = vshrl.u32 %v1465_v53, %v198_v35  ;;  %v1282_v58 = vadd.s32 4294967169, %v342_v37  ;;  %v199_v59 = vshrl.u32 %v1460_v39, %v198_v35  ;;  %vm218_vm6 = vcmp.lt.s32.totalorder %v196_v34, 4 }
  0xb1   : > { %v202_v55 = vor.u32 %v201_v47, %v200_v40  ;;  %v205_v56 = vor.u32 %v204_v48, %v203_v42  ;;  %v208_v57 = vor.u32 %v207_v49, %v206_v44  ;;  %v211_v60 = vor.u32 %v210_v52, %v209_v46 }
  0xb2   : > { %v214_v61 = vor.u32 %v213_v54, %v212_v51  ;;  %vm217_vm7 = vcmp.lt.s32.totalorder %v196_v34, 3  ;;  %v346_v4 = vor.u32 8388608, %v345_v38  ;;  %v348_v5 = vadd.s32 1, %v1282_v58 }
  0xb3   : > { %v220_v62 = vsel %vm218_vm6, %v208_v57, 2102212464  ;;  %v223_v63 = vsel %vm215_vm4, %v202_v55, %v205_v56  ;;  %v227_v1 = vsel %vm215_vm4, %v205_v56, %v208_v57  ;;  %v224_v2 = vsel %vm218_vm6, %v211_v60, 920167782 }
  0xb4   : > { %v228_v3 = vsel %vm218_vm6, %v214_v61, 1326507024  ;;  %v219_v6 = vsel %vm215_vm4, %v199_v59, %v202_v55  ;;  %v221_v7 = vsel %vm217_vm7, %v205_v56, %v220_v62  ;;  %v225_v8 = vsel %vm217_vm7, %v208_v57, %v224_v2 }
  0xb5   : > { %v229_v9 = vsel %vm217_vm7, %v211_v60, %v228_v3  ;;  %v226_v10 = vsel %vm216_vm5, %v223_v63, %v225_v8  ;;  %vm349_vm8 = vcmp.gt.s32.totalorder %v348_v5, 0  ;;  %v1631_v19 = vsel %vm216_vm5, %v219_v6, %v221_v7 }
  0xb6   : > { %v230_v11 = vsel %vm216_vm5, %v227_v1, %v229_v9  ;;  %v256_v17 = vand.u32 65535, %v226_v10  ;;  %v257_v18 = vshrl.u32 %v226_v10, 16  ;;  %v350_v22 = vsel %vm349_vm8, %v348_v5, 0 }
  0xb7   : > { %v234_v13 = vand.u32 65535, %v230_v11  ;;  %v235_v16 = vshrl.u32 %v230_v11, 16  ;;  %v1633_v23 = vshll.u32 %v346_v4, 8  ;;  %v352_v46 = vand.u32 31, %v350_v22 }
  0xb8   : > { %v259_v26 = vmul.u32 %v257_v18, %v232_v36  ;;  %v260_v27 = vmul.u32 %v256_v17, %v233_v12  ;;  %v258_v33 = vmul.u32 %v256_v17, %v232_v36  ;;  %v261_v35 = vmul.u32 %v257_v18, %v233_v12 }
  0xb9   : > { %v237_v20 = vmul.u32 %v235_v16, %v232_v36  ;;  %v238_v21 = vmul.u32 %v234_v13, %v233_v12  ;;  %v236_v24 = vmul.u32 %v234_v13, %v232_v36  ;;  %v239_v25 = vmul.u32 %v235_v16, %v233_v12 }
  0xba   : > { %v262_v40 = vshll.u32 %v259_v26, 16  ;;  %v263_v42 = vshrl.u32 %v259_v26, 16  ;;  %v264_v44 = vshll.u32 %v260_v27, 16  ;;  %v1466_v47 = vmov 0  }
  0xbb   : > { %v240_v31 = vshll.u32 %v237_v20, 16  ;;  %v241_v32 = vshrl.u32 %v237_v20, 16  ;;  %v242_v37 = vshll.u32 %v238_v21, 16  ;;  %v243_v38 = vshrl.u32 %v238_v21, 16 }
  0xbc   : > { %v265_v49 = vshrl.u32 %v260_v27, 16  ;;  %vm266_vm10 = vc.u32 %v258_v33, %v262_v40  ;;  %v268_v51 = vadd.s32 %v262_v40, %v258_v33  ;;  %v1637_v36 = vsub.s32 32, %v352_v46  ;;  %v171_v40 = vpop.permute.xlu0 %170 }
  0xbd   : > { %vm244_vm9 = vc.u32 %v236_v24, %v240_v31  ;;  %v246_v34 = vadd.s32 %v240_v31, %v236_v24  ;;  %v267_v54 = vsel %vm266_vm10, 1, %v1466_v47  ;;  %v1640_v57 = vshrl.u32 %v350_v22, 5 }
  0xbe   : > { %v245_v48 = vsel %vm244_vm9, 1, %v1466_v47  ;;  %v269_v56 = vadd.s32 %v267_v54, %v261_v35  ;;  %vm270_vm12 = vc.u32 %v268_v51, %v264_v44  ;;  %v1643_v60 = vadd.s32 %v268_v51, %v264_v44 }
  0xbf   : > { %v247_v52 = vadd.s32 %v245_v48, %v239_v25  ;;  %vm248_vm11 = vc.u32 %v246_v34, %v242_v37  ;;  %v271_v59 = vsel %vm270_vm12, 1, %v1466_v47  ;;  %v355_v61 = vshll.u32 %v1460_v39, %v352_v46 }
  0xc0   : > { %v249_v55 = vsel %vm248_vm11, 1, %v1466_v47  ;;  %v273_v62 = vadd.s32 %v271_v59, %v269_v56  ;;  %v356_v63 = vshrl.u32 %v1461_v41, %v1637_v36  ;;  %v358_v1 = vshll.u32 %v1461_v41, %v352_v46 }
  0xc1   : > { %v251_v58 = vadd.s32 %v249_v55, %v247_v52  ;;  %v359_v2 = vshrl.u32 %v1462_v43, %v1637_v36  ;;  %v361_v4 = vshll.u32 %v1462_v43, %v352_v46  ;;  %v362_v5 = vshrl.u32 %v1463_v45, %v1637_v36 }
  0xc2   : > { %v364_v6 = vshll.u32 %v1463_v45, %v352_v46  ;;  %v274_v7 = vadd.s32 %v273_v62, %v263_v42  ;;  %v1655_v8 = vor.u32 %v356_v63, %v355_v61  ;;  %v365_v10 = vshrl.u32 %v1464_v50, %v1637_v36 }
  0xc3   : > { %v252_v3 = vadd.s32 %v251_v58, %v241_v32  ;;  %v1657_v9 = vor.u32 %v359_v2, %v358_v1  ;;  %v1663_v12 = vor.u32 %v362_v5, %v361_v4  ;;  %v367_v13 = vshll.u32 %v1464_v50, %v352_v46 }
  0xc4   : > { %v368_v16 = vshrl.u32 %v1465_v53, %v1637_v36  ;;  %v275_v17 = vadd.s32 %v274_v7, %v265_v49  ;;  %v366_v18 = vor.u32 %v365_v10, %v364_v6  ;;  %v143_v20 = vmul.f32 804.24774, %v1574_v0 }
  0xc5   : > { %v1661_v11 = vadd.s32 %v252_v3, %v243_v38  ;;  %v276_v21 = vmul.u32 %v1606_v29, %v1631_v19  ;;  %vm370_vm14 = vcmp.lt.s32.totalorder %v1640_v57, 1  ;;  %vm373_vm15 = vcmp.lt.s32.totalorder %v1640_v57, 4 }
  0xc6   : > { %v369_v22 = vor.u32 %v368_v16, %v367_v13  ;;  %v279_v24 = vadd.s32 1, %v275_v17  ;;  %v378_v25 = vsel %vm370_vm14, %v1655_v8, %v1657_v9  ;;  %v387_v26 = vand.u32 65535, %v1633_v23 }
  0xc7   : > { %vm278_vm13 = vc.u32 %v1661_v11, %v1643_v60  ;;  %vm372_vm3 = vcmp.lt.s32.totalorder %v1640_v57, 3  ;;  %v379_v0 = vsel %vm373_vm15, %v366_v18, 920167782  ;;  %v382_v29 = vsel %vm370_vm14, %v1657_v9, %v1663_v12 }
  0xc8   : > { %v383_v19 = vsel %vm373_vm15, %v369_v22, 1326507024  ;;  %v280_v27 = vsel %vm278_vm13, %v279_v24, %v275_v17  ;;  %vm371_vm4 = vcmp.lt.s32.totalorder %v1640_v57, 2  ;;  %v380_v31 = vsel %vm372_vm3, %v1663_v12, %v379_v0 }
  0xc9   : > { %v384_v32 = vsel %vm372_vm3, %v366_v18, %v383_v19  ;;  %v281_v33 = vadd.s32 %v280_v27, %v276_v21  ;;  %v381_v35 = vsel %vm371_vm4, %v378_v25, %v380_v31  ;;  %v388_v38 = vshrl.u32 %v1633_v23, 16 }
  0xca   : > { %v385_v37 = vsel %vm371_vm4, %v382_v29, %v384_v32  ;;  %v411_v44 = vand.u32 65535, %v381_v35  ;;  %v412_v46 = vshrl.u32 %v381_v35, 16  ;;  %v1701_v52 = vsel %vm173_vm0, %v143_v20, %v171_v40 }
  0xcb   : > { %v389_v42 = vand.u32 65535, %v385_v37  ;;  %v390_v34 = vshrl.u32 %v385_v37, 16  ;;  %v282_v48 = vadd.s32 536870912, %v281_v33  ;;  %v496_v1 = vand.u32 2139095040, %v1701_v52 }
  0xcc   : > { %v414_v55 = vmul.u32 %v412_v46, %v387_v26  ;;  %v415_v59 = vmul.u32 %v411_v44, %v388_v38  ;;  %v413_v4 = vmul.u32 %v411_v44, %v387_v26  ;;  %v416_v10 = vmul.u32 %v412_v46, %v388_v38 }
  0xcd   : > { %v392_v49 = vmul.u32 %v390_v34, %v387_v26  ;;  %v393_v51 = vmul.u32 %v389_v42, %v388_v38  ;;  %v1703_v54 = vshrl.u32 %v282_v48, 30  ;;  %v391_v56 = vmul.u32 %v389_v42, %v387_v26 }
  0xce   : > { %v394_v62 = vmul.u32 %v390_v34, %v388_v38  ;;  %v417_v63 = vshll.u32 %v414_v55, 16  ;;  %v419_v16 = vshll.u32 %v415_v59, 16  ;;  %v497_v25 = vshrl.u32 %v496_v1, 23 }
  0xcf   : > { %v395_v58 = vshll.u32 %v392_v49, 16  ;;  %v284_v61 = vshll.u32 %v1703_v54, 30  ;;  %v397_v2 = vshll.u32 %v393_v51, 16  ;;  %v396_v6 = vshrl.u32 %v392_v49, 16 }
  0xd0   : > { %vm421_vm7 = vc.u32 %v413_v4, %v417_v63  ;;  %v423_v22 = vadd.s32 %v417_v63, %v413_v4  ;;  %v375_v29 = vsel %vm373_vm15, %v1663_v12, 2102212464  ;;  %v354_v27 = vshrl.u32 %v1460_v39, %v1637_v36 }
  0xd1   : > { %vm399_vm5 = vc.u32 %v391_v56, %v395_v58  ;;  %v401_v3 = vadd.s32 %v395_v58, %v391_v56  ;;  %v285_v5 = vsub.s32 %v281_v33, %v284_v61  ;;  %v422_v20 = vsel %vm421_vm7, 1, %v1466_v47 }
  0xd2   : > { %v400_v7 = vsel %vm399_vm5, 1, %v1466_v47  ;;  %v424_v24 = vadd.s32 %v422_v20, %v416_v10  ;;  %vm425_vm9 = vc.u32 %v423_v22, %v419_v16  ;;  %v398_v31 = vshrl.u32 %v393_v51, 16 }
  0xd3   : > { %v402_v13 = vadd.s32 %v400_v7, %v394_v62  ;;  %vm403_vm6 = vc.u32 %v401_v3, %v397_v2  ;;  %vm286_vm8 = vcmp.lt.s32.totalorder %v285_v5, 0  ;;  %v287_v17 = vsub.s32 0, %v285_v5 }
  0xd4   : > { %v404_v18 = vsel %vm403_vm6, 1, %v1466_v47  ;;  %v426_v32 = vsel %vm425_vm9, 1, %v1466_v47  ;;  %v1285_v33 = vadd.s32 4294967169, %v497_v25  ;;  %v418_v37 = vshrl.u32 %v414_v55, 16 }
  0xd5   : > { %v406_v21 = vadd.s32 %v404_v18, %v402_v13  ;;  %v288_v26 = vsel %vm286_vm8, %v287_v17, %v285_v5  ;;  %v428_v38 = vadd.s32 %v426_v32, %v424_v24  ;;  %v493_v40 = vand.u32 2147483647, %v1701_v52 }
  0xd6   : > { %v289_v0 = vclz %v288_v26  ;;  %v374_v42 = vsel %vm370_vm14, %v354_v27, %v1655_v8  ;;  %v376_v12 = vsel %vm372_vm3, %v1657_v9, %v375_v29  ;;  %v503_v36 = vadd.s32 1, %v1285_v33 }
  0xd7   : > { %v407_v19 = vadd.s32 %v406_v21, %v396_v6  ;;  %v420_v44 = vshrl.u32 %v415_v59, 16  ;;  %v429_v46 = vadd.s32 %v428_v38, %v418_v37  ;;  %v277_v48 = vadd.s32 %v1643_v60, %v1661_v11 }
  0xd8   : > { %v1280_v35 = vadd.s32 4294967294, %v289_v0  ;;  %v1727_v51 = vadd.s32 %v423_v22, %v419_v16  ;;  %vm504_vm11 = vcmp.gt.s32.totalorder %v503_v36, 0  ;;  %v377_v8 = vsel %vm371_vm4, %v374_v42, %v376_v12 }
  0xd9   : > { %v1723_v34 = vadd.s32 %v407_v19, %v398_v31  ;;  %v430_v58 = vadd.s32 %v429_v46, %v420_v44  ;;  %v500_v9 = vand.u32 8388607, %v493_v40  ;;  %v505_v59 = vsel %vm504_vm11, %v503_v36, 0 }
  0xda   : > { %vm1281_vm10 = vcmp.lt.s32.totalorder %v1280_v35, 0  ;;  %v431_v63 = vmul.u32 %v1633_v23, %v377_v8  ;;  %v507_v1 = vand.u32 31, %v505_v59  ;;  %v1736_v7 = vshrl.u32 %v505_v59, 5 }
  0xdb   : > { %v292_v49 = vsel %vm1281_vm10, 0, %v1280_v35  ;;  %vm433_vm12 = vc.u32 %v1723_v34, %v1727_v51  ;;  %v434_v11 = vadd.s32 1, %v430_v58  ;;  %v501_v6 = vor.u32 8388608, %v500_v9 }
  0xdc   : > { %v293_v55 = vsub.s32 32, %v292_v49  ;;  %v297_v56 = vsub.s32 4294967266, %v292_v49  ;;  %v294_v61 = vshll.u32 %v285_v5, %v292_v49  ;;  %v1738_v10 = vsub.s32 32, %v507_v1 }
  0xdd   : > { %v435_v4 = vsel %vm433_vm12, %v434_v11, %v430_v58  ;;  %v510_v17 = vshll.u32 %v1460_v39, %v507_v1  ;;  %v513_v5 = vshll.u32 %v1461_v41, %v507_v1  ;;  %v516_v21 = vshll.u32 %v1462_v43, %v507_v1 }
  0xde   : > { %v295_v62 = vshrl.u32 %v277_v48, %v293_v55  ;;  %v298_v60 = vadd.s32 127, %v297_v56  ;;  %v436_v57 = vadd.s32 %v435_v4, %v431_v63  ;;  %v511_v23 = vshrl.u32 %v1461_v41, %v1738_v10 }
  0xdf   : > { %v514_v20 = vshrl.u32 %v1462_v43, %v1738_v10  ;;  %v517_v24 = vshrl.u32 %v1463_v45, %v1738_v10  ;;  %v519_v25 = vshll.u32 %v1463_v45, %v507_v1  ;;  %v520_v26 = vshrl.u32 %v1464_v50, %v1738_v10 }
  0xe0   : > { %v296_v2 = vor.u32 %v295_v62, %v294_v61  ;;  %v299_v3 = vshll.u32 %v298_v60, 23  ;;  %v437_v18 = vadd.s32 536870912, %v436_v57  ;;  %v1754_v29 = vor.u32 %v511_v23, %v510_v17 }
  0xe1   : > { %v1756_v19 = vor.u32 %v514_v20, %v513_v5  ;;  %v523_v41 = vshrl.u32 %v1465_v53, %v1738_v10  ;;  %v1760_v43 = vor.u32 %v517_v24, %v516_v21  ;;  %v521_v31 = vor.u32 %v520_v26, %v519_v25 }
  0xe2   : > { %v300_v13 = vor.u32 4788187, %v299_v3  ;;  %v303_v16 = vcvt.s32.f32 %v296_v2  ;;  %v1752_v0 = vshrl.u32 %v437_v18, 30  ;;  %v522_v32 = vshll.u32 %v1464_v50, %v507_v1 }
  0xe3   : > { %vm185_vm13 = vcmp.lt.s32.totalorder %v1594_v14, 0  ;;  %v1765_v33 = vshll.u32 %v501_v6, 8  ;;  %vm525_vm14 = vcmp.lt.s32.totalorder %v1736_v7, 1  ;;  %vm528_vm15 = vcmp.lt.s32.totalorder %v1736_v7, 4 }
  0xe4   : > { %v301_v22 = vand.u32 2147483647, %v300_v13  ;;  %v439_v45 = vshll.u32 %v1752_v0, 30  ;;  %v524_v37 = vor.u32 %v523_v41, %v522_v32  ;;  %vm527_vm3 = vcmp.lt.s32.totalorder %v1736_v7, 3 }
  0xe5   : > { %v533_v50 = vsel %vm525_vm14, %v1754_v29, %v1756_v19  ;;  %v534_v53 = vsel %vm528_vm15, %v521_v31, 920167782  ;;  %vm1778_vm4 = vcmp.le.f32.partialorder %v183_v15, 0.7853982  ;;  %vm526_vm6 = vcmp.lt.s32.totalorder %v1736_v7, 2 }
  0xe6   : > { %v304_v27 = vmul.f32 %v303_v16, %v301_v22  ;;  %v440_v38 = vsub.s32 %v436_v57, %v439_v45  ;;  %v535_v36 = vsel %vm527_vm3, %v1760_v43, %v534_v53  ;;  %v537_v49 = vsel %vm525_vm14, %v1756_v19, %v1760_v43 }
  0xe7   : > { %v536_v48 = vsel %vm526_vm6, %v533_v50, %v535_v36  ;;  %v538_v55 = vsel %vm528_vm15, %v524_v37, 1326507024  ;;  %v542_v58 = vand.u32 65535, %v1765_v33  ;;  %v543_v60 = vshrl.u32 %v1765_v33, 16 }
  0xe8   : > { %v305_v35 = vxor.u32 2147483648, %v304_v27  ;;  %vm441_vm5 = vcmp.lt.s32.totalorder %v440_v38, 0  ;;  %v442_v46 = vsub.s32 0, %v440_v38  ;;  %v539_v8 = vsel %vm527_vm3, %v521_v31, %v538_v55 }
  0xe9   : > { %v567_v9 = vshrl.u32 %v536_v48, 16  ;;  %v540_v61 = vsel %vm526_vm6, %v537_v49, %v539_v8  ;;  %v566_v62 = vand.u32 65535, %v536_v48  ;;  %v432_v6 = vadd.s32 %v1727_v51, %v1723_v34 }
  0xea   : > { %v306_v12 = vsel %vm185_vm13, %v305_v35, %v304_v27  ;;  %v443_v56 = vsel %vm441_vm5, %v442_v46, %v440_v38  ;;  %v544_v11 = vand.u32 65535, %v540_v61  ;;  %v545_v63 = vshrl.u32 %v540_v61, 16 }
  0xeb   : > { %v1790_v44 = vsel %vm1778_vm4, %v1594_v14, %v306_v12  ;;  %v444_v59 = vclz %v443_v56  ;;  %v569_v1 = vmul.u32 %v567_v9, %v542_v58  ;;  %v568_v13 = vmul.u32 %v566_v62, %v542_v58 }
  0xec   : > { %v1795_v15 = vmul.f32 %v1790_v44, %v1790_v44  ;;  %v547_v4 = vmul.u32 %v545_v63, %v542_v58  ;;  %v548_v57 = vmul.u32 %v544_v11, %v543_v60  ;;  %v546_v17 = vmul.u32 %v544_v11, %v542_v58 }
  0xed   : > { %v1283_v3 = vadd.s32 4294967294, %v444_v59  ;;  %v572_v18 = vshll.u32 %v569_v1, 16  ;;  %v570_v22 = vmul.u32 %v566_v62, %v543_v60  ;;  %v549_v24 = vmul.u32 %v545_v63, %v543_v60 }
  0xee   : > { %v319_v2 = vmul.f32 -0.00019511016, %v1795_v15  ;;  %v550_v5 = vshll.u32 %v547_v4, 16  ;;  %v552_v25 = vshll.u32 %v548_v57, 16  ;;  %v571_v51 = vmul.u32 %v567_v9, %v543_v60 }
  0xef   : > { %vm1284_vm7 = vcmp.lt.s32.totalorder %v1283_v3, 0  ;;  %vm576_vm10 = vc.u32 %v568_v13, %v572_v18  ;;  %v551_v37 = vshrl.u32 %v547_v4, 16  ;;  %v574_v12 = vshll.u32 %v570_v22, 16 }
  0xf0   : > { %v447_v16 = vsel %vm1284_vm7, 0, %v1283_v3  ;;  %v320_v23 = vadd.f32 0.008332121, %v319_v2  ;;  %vm554_vm8 = vc.u32 %v546_v17, %v550_v5  ;;  %v556_v26 = vadd.s32 %v550_v5, %v546_v17 }
  0xf1   : > { %v448_v20 = vsub.s32 32, %v447_v16  ;;  %v452_v21 = vsub.s32 4294967266, %v447_v16  ;;  %v449_v41 = vshll.u32 %v440_v38, %v447_v16  ;;  %v555_v32 = vsel %vm554_vm8, 1, %v1466_v47 }
  0xf2   : > { %v557_v34 = vadd.s32 %v555_v32, %v549_v24  ;;  %vm558_vm9 = vc.u32 %v556_v26, %v552_v25  ;;  %v577_v36 = vsel %vm576_vm10, 1, %v1466_v47  ;;  %v578_v46 = vadd.s32 %v572_v18, %v568_v13 }
  0xf3   : > { %v450_v27 = vshrl.u32 %v432_v6, %v448_v20  ;;  %v453_v31 = vadd.s32 127, %v452_v21  ;;  %v559_v50 = vsel %vm558_vm9, 1, %v1466_v47  ;;  %v509_v38 = vshrl.u32 %v1460_v39, %v1738_v10 }
  0xf4   : > { %v561_v53 = vadd.s32 %v559_v50, %v557_v34  ;;  %v579_v49 = vadd.s32 %v577_v36, %v571_v51  ;;  %v321_v55 = vmul.f32 %v320_v23, %v1795_v15  ;;  %v530_v56 = vsel %vm528_vm15, %v1760_v43, 2102212464 }
  0xf5   : > { %v451_v45 = vor.u32 %v450_v27, %v449_v41  ;;  %v454_v35 = vshll.u32 %v453_v31, 23  ;;  %vm580_vm11 = vc.u32 %v578_v46, %v574_v12  ;;  %v553_v59 = vshrl.u32 %v548_v57, 16 }
  0xf6   : > { %v562_v8 = vadd.s32 %v561_v53, %v551_v37  ;;  %v581_v61 = vsel %vm580_vm11, 1, %v1466_v47  ;;  %v573_v62 = vshrl.u32 %v569_v1, 16  ;;  %v312_v11 = vmul.f32 -0.001358992, %v1795_v15 }
  0xf7   : > { %v455_v48 = vor.u32 4788187, %v454_v35  ;;  %v458_v9 = vcvt.s32.f32 %v451_v45  ;;  %v583_v60 = vadd.s32 %v581_v61, %v579_v49  ;;  %v529_v39 = vsel %vm525_vm14, %v509_v38, %v1754_v29 }
  0xf8   : > { %v531_v10 = vsel %vm527_vm3, %v1756_v19, %v530_v56  ;;  %v1831_v43 = vadd.s32 %v562_v8, %v553_v59  ;;  %v575_v2 = vshrl.u32 %v570_v22, 16  ;;  %v313_v4 = vadd.f32 0.041655596, %v312_v11 }
  0xf9   : > { %v456_v58 = vand.u32 2147483647, %v455_v48  ;;  %v584_v3 = vadd.s32 %v583_v60, %v573_v62  ;;  %v322_v57 = vadd.f32 -0.16666654, %v321_v55  ;;  %v1833_v1 = vadd.s32 %v578_v46, %v574_v12 }
  0xfa   : > { %vm340_vm12 = vcmp.lt.s32.totalorder %v1604_v28, 0  ;;  %v532_v6 = vsel %vm526_vm6, %v529_v39, %v531_v10  ;;  %v314_v29 = vmul.f32 %v313_v4, %v1795_v15  ;;  %v307_v16 = vsub.s32 4, %v1703_v54 }
  0xfb   : > { %v459_v63 = vmul.f32 %v458_v9, %v456_v58  ;;  %v585_v13 = vadd.s32 %v584_v3, %v575_v2  ;;  %vm1842_vm14 = vcmp.le.f32.partialorder %v338_v30, 0.7853982  ;;  %vm588_vm15 = vc.u32 %v1831_v43, %v1833_v1 }
  0xfc   : > { %v315_v18 = vadd.f32 -0.4999988, %v314_v29  ;;  %v323_v23 = vmul.f32 %v322_v57, %v1795_v15  ;;  %v586_v30 = vmul.u32 %v1765_v33, %v532_v6  ;;  %v308_v22 = vsel %vm185_vm13, %v307_v16, %v1703_v54 }
  0xfd   : > { %v460_v47 = vxor.u32 2147483648, %v459_v63  ;;  %v589_v5 = vadd.s32 1, %v585_v13  ;;  %v1861_v32 = vsel %vm1778_vm4, 0, %v308_v22  ;;  %v462_v34 = vsub.s32 4, %v1752_v0 }
  0xfe   : > { %v316_v26 = vmul.f32 %v315_v18, %v1795_v15  ;;  %v324_v41 = vadd.f32 1.0, %v323_v23  ;;  %v792_v53 = vand.u32 3, %v1861_v32  ;;  %vm326_vm6 = vweird.f32 %v1594_v14 }
  0xff   : > { %v461_v17 = vsel %vm340_vm12, %v460_v47, %v459_v63  ;;  %v590_v21 = vsel %vm588_vm15, %v589_v5, %v585_v13  ;;  %v463_v42 = vsel %vm340_vm12, %v462_v34, %v1752_v0  ;;  %v587_v2 = vadd.s32 %v1833_v1, %v1831_v43 }
 0x100   : > { %v464_v7 = vsel %vm1842_vm14, %v1604_v28, %v461_v17  ;;  %v591_v25 = vadd.s32 %v590_v21, %v586_v30  ;;  %v1866_v45 = vadd.f32 1.0, %v316_v26  ;;  %v1869_v54 = vmul.f32 %v324_v41, %v1790_v44 }
 0x101   : > { %v466_v20 = vmul.f32 %v464_v7, %v464_v7  ;;  %v465_v38 = vsel %vm1842_vm14, 0, %v463_v42  ;;  %vm793_vm3 = vcmp.lt.s32.totalorder %v792_v53, 2  ;;  %vm794_vm4 = vcmp.eq.s32.totalorder %v792_v53, 0 }
 0x102   : > { %v592_v31 = vadd.s32 536870912, %v591_v25  ;;  %v334_v46 = vxor.u32 2147483648, %v1866_v45  ;;  %v331_v49 = vxor.u32 2147483648, %v1869_v54  ;;  %vm797_vm5 = vcmp.eq.s32.totalorder %v792_v53, 2 }
 0x103   : > { %v474_v24 = vmul.f32 -0.00019511016, %v466_v20  ;;  %v467_v35 = vmul.f32 -0.001358992, %v466_v20  ;;  %v482_v11 = vadd.s32 3, %v465_v38  ;;  %vm481_vm11 = vweird.f32 %v1604_v28 }
 0x104   : > { %v1864_v33 = vshrl.u32 %v592_v31, 30  ;;  %v796_v8 = vsel %vm794_vm4, %v1866_v45, %v331_v49  ;;  %v799_v58 = vsel %vm797_vm5, %v334_v46, %v1869_v54  ;;  %vm495_vm14 = vcmp.lt.s32.totalorder %v1701_v52, 0 }
 0x105   : > { %v475_v27 = vadd.f32 0.008332121, %v474_v24  ;;  %v468_v50 = vadd.f32 0.041655596, %v467_v35  ;;  %v800_v59 = vsel %vm793_vm3, %v796_v8, %v799_v58  ;;  %v483_v57 = vand.u32 3, %v482_v11 }
 0x106   : > { %v594_v15 = vshll.u32 %v1864_v33, 30  ;;  %v1889_v61 = vsel %vm326_vm6, nan, %v800_v59  ;;  %vm1907_vm15 = vcmp.le.f32.partialorder %v493_v40, 0.7853982  ;;  %v617_v41 = vsub.s32 4, %v1864_v33 }
 0x107   : > { %v476_v51 = vmul.f32 %v475_v27, %v466_v20  ;;  %v469_v48 = vmul.f32 %v468_v50, %v466_v20  ;;  %1115 = vrot.lane.b32.xlu2 %v1889_v61, %s1458_s24  ;;  %vm485_vm8 = vcmp.eq.s32.totalorder %v483_v57, 0  ;;  %vm488_vm9 = vcmp.eq.s32.totalorder %v483_v57, 2 }
 0x108   : > { %v595_v36 = vsub.s32 %v591_v25, %v594_v15  ;;  %vm484_vm10 = vcmp.lt.s32.totalorder %v483_v57, 2  ;;  %v618_v15 = vsel %vm495_vm14, %v617_v41, %v1864_v33  ;;  %v327_v8 = vadd.s32 3, %v1861_v32  ;;  %v1358_v41 = vld [vmem:[%s1567_s22] sm:$0xff] }
 0x109   : > { %v477_v37 = vadd.f32 -0.16666654, %v476_v51  ;;  %v470_v55 = vadd.f32 -0.4999988, %v469_v48 }
 0x10a   : > { %vm596_vm13 = vcmp.lt.s32.totalorder %v595_v36, 0  ;;  %v597_v44 = vsub.s32 0, %v595_v36 }
 0x10b   : > { %v478_v12 = vmul.f32 %v477_v37, %v466_v20  ;;  %v471_v62 = vmul.f32 %v470_v55, %v466_v20  ;;  %v946_v20 = vand.u32 3, %v465_v38 }
 0x10c   : > { %v598_v0 = vsel %vm596_vm13, %v597_v44, %v595_v36 }
 0x10d   : > { %v479_v56 = vadd.f32 1.0, %v478_v12  ;;  %v599_v9 = vclz %v598_v0  ;;  %v472_v10 = vadd.f32 1.0, %v471_v62  ;;  %vm948_vm12 = vcmp.eq.s32.totalorder %v946_v20, 0 }
 0x10e   : > { %vm951_vm13 = vcmp.eq.s32.totalorder %v946_v20, 2  ;;  %vm947_vm3 = vcmp.lt.s32.totalorder %v946_v20, 2  ;;  %v620_v12 = vsel %vm1907_vm15, 0, %v618_v15 }
 0x10f   : > { %v1286_v60 = vadd.s32 4294967294, %v599_v9  ;;  %v480_v63 = vmul.f32 %v479_v56, %v464_v7  ;;  %v489_v16 = vxor.u32 2147483648, %v472_v10  ;;  %1127 = vrot.lane.b32.xlu2 %v1889_v61, %s1457_s23  ;;  %v637_v44 = vadd.s32 3, %v620_v12 }
 0x110   : > { %v1100_v28 = vand.u32 3, %v620_v12 }
 0x111   : > { %vm1287_vm7 = vcmp.lt.s32.totalorder %v1286_v60, 0  ;;  %v486_v47 = vxor.u32 2147483648, %v480_v63  ;;  %v490_v18 = vsel %vm488_vm9, %v489_v16, %v480_v63  ;;  %v953_v31 = vsel %vm951_vm13, %v489_v16, %v480_v63 }
 0x112   : > { %v602_v39 = vsel %vm1287_vm7, 0, %v1286_v60  ;;  %v638_v58 = vand.u32 3, %v637_v44  ;;  %vm1101_vm4 = vcmp.lt.s32.totalorder %v1100_v28, 2  ;;  %vm1102_vm5 = vcmp.eq.s32.totalorder %v1100_v28, 0 }
 0x113   : > { %v603_v3 = vsub.s32 32, %v602_v39  ;;  %v607_v4 = vsub.s32 4294967266, %v602_v39  ;;  %v604_v6 = vshll.u32 %v595_v36, %v602_v39  ;;  %v487_v7 = vsel %vm485_vm8, %v472_v10, %v486_v47 }
 0x114   : > { %v491_v23 = vsel %vm484_vm10, %v487_v7, %v490_v18  ;;  %v950_v24 = vsel %vm948_vm12, %v472_v10, %v486_v47  ;;  %v328_v60 = vand.u32 3, %v327_v8  ;;  %vm1105_vm7 = vcmp.eq.s32.totalorder %v1100_v28, 2 }
 0x115   : > { %v605_v13 = vshrl.u32 %v587_v2, %v603_v3  ;;  %v608_v29 = vadd.s32 127, %v607_v4  ;;  %v1900_v21 = vsel %vm481_vm11, nan, %v491_v23  ;;  %v954_v51 = vsel %vm947_vm3, %v950_v24, %v953_v31 }
 0x116   : > { %v1918_v40 = vsel %vm481_vm11, nan, %v954_v51  ;;  %vm639_vm8 = vcmp.lt.s32.totalorder %v638_v58, 2  ;;  %vm640_vm9 = vcmp.eq.s32.totalorder %v638_v58, 0  ;;  %vm643_vm10 = vcmp.eq.s32.totalorder %v638_v58, 2 }
 0x117   : > { %v606_v19 = vor.u32 %v605_v13, %v604_v6  ;;  %v609_v17 = vshll.u32 %v608_v29, 23  ;;  %1144 = vrot.lane.b32.xlu2 %v1900_v21, %s1459_s25  ;;  %vm636_vm11 = vweird.f32 %v1701_v52  ;;  %vm330_vm12 = vcmp.eq.s32.totalorder %v328_v60, 0 }
 0x118   : > { %v332_v57 = vsel %vm330_vm12, %v1866_v45, %v331_v49 }
 0x119   : > { %v610_v5 = vor.u32 4788187, %v609_v17  ;;  %v613_v1 = vcvt.s32.f32 %v606_v19 }
 0x11b   : > { %v611_v43 = vand.u32 2147483647, %v610_v5 }
 0x11d   : > { %v614_v30 = vmul.f32 %v613_v1, %v611_v43 }
 0x11f   : > { %v615_v22 = vxor.u32 2147483648, %v614_v30  ;;  %1135 = vrot.lane.b32.xlu2 %v1918_v40, %s1458_s24 }
 0x121   : > { %v616_v26 = vsel %vm495_vm14, %v615_v22, %v614_v30  ;;  %vm333_vm14 = vcmp.eq.s32.totalorder %v328_v60, 2 }
 0x122   : > { %v619_v27 = vsel %vm1907_vm15, %v1701_v52, %v616_v26  ;;  %vm329_vm15 = vcmp.lt.s32.totalorder %v328_v60, 2  ;;  %v335_v47 = vsel %vm333_vm14, %v334_v46, %v1869_v54 }
 0x123   : > { %v621_v34 = vmul.f32 %v619_v27, %v619_v27  ;;  %v336_v52 = vsel %vm329_vm15, %v332_v57, %v335_v47 }
 0x124   : > { %v337_v6 = vsel %vm326_vm6, nan, %v336_v52 }
 0x125   : > { %v629_v35 = vmul.f32 -0.00019511016, %v621_v34  ;;  %v622_v37 = vmul.f32 -0.001358992, %v621_v34 }
 0x127   : > { %v630_v50 = vadd.f32 0.008332121, %v629_v35  ;;  %v623_v42 = vadd.f32 0.041655596, %v622_v37  ;;  %1138 = vrot.lane.b32.xlu2 %v1900_v21, %s1458_s24 }
 0x129   : > { %v631_v53 = vmul.f32 %v630_v50, %v621_v34  ;;  %v624_v36 = vmul.f32 %v623_v42, %v621_v34 }
 0x12b   : > { %v632_v48 = vadd.f32 -0.16666654, %v631_v53  ;;  %v625_v38 = vadd.f32 -0.4999988, %v624_v36 }
 0x12d   : > { %v633_v55 = vmul.f32 %v632_v48, %v621_v34  ;;  %v626_v56 = vmul.f32 %v625_v38, %v621_v34 }
 0x12f   : > { %v634_v33 = vadd.f32 1.0, %v633_v55  ;;  %v627_v0 = vadd.f32 1.0, %v626_v56 }
 0x131   : > { %v635_v9 = vmul.f32 %v634_v33, %v619_v27  ;;  %v644_v59 = vxor.u32 2147483648, %v627_v0 }
 0x133   : > { %v641_v62 = vxor.u32 2147483648, %v635_v9  ;;  %v1107_v63 = vsel %vm1105_vm7, %v644_v59, %v635_v9  ;;  %v645_v10 = vsel %vm643_vm10, %v644_v59, %v635_v9 }
 0x135   : > { %v1104_v11 = vsel %vm1102_vm5, %v627_v0, %v641_v62  ;;  %v642_v39 = vsel %vm640_vm9, %v627_v0, %v641_v62 }
 0x136   : > { %v1108_v32 = vsel %vm1101_vm4, %v1104_v11, %v1107_v63  ;;  %v646_v2 = vsel %vm639_vm8, %v642_v39, %v645_v10 }
 0x137   : > { %v1109_v3 = vsel %vm636_vm11, nan, %v1108_v32  ;;  %v647_v4 = vsel %vm636_vm11, nan, %v646_v2 }
 0x138   : > { %1167 = vrot.lane.b32.xlu0 %v1109_v3, %s1458_s24  ;;  %1163 = vrot.lane.b32.xlu1 %v647_v4, %s1457_s23 }
 0x140   : > { %1121 = vrot.lane.b32.xlu0 %v1889_v61, %s1459_s25  ;;  %1111 = vrot.lane.b32.xlu1 %v337_v6, %s1457_s23 }
 0x148   : > { %1131 = vrot.lane.b32.xlu0 %v1900_v21, %s1457_s23  ;;  %1124 = vrot.lane.b32.xlu1 %v337_v6, %s1459_s25 }
 0x150   : > { %1159 = vrot.lane.b32.xlu0 %v1918_v40, %s1457_s23  ;;  %1141 = vrot.lane.b32.xlu1 %v1918_v40, %s1459_s25 }
 0x158   : > { %1170 = vrot.lane.b32.xlu0 %v647_v4, %s1458_s24  ;;  %1118 = vrot.lane.b32.xlu1 %v337_v6, %s1458_s24 }
 0x160   : > { %1173 = vrot.lane.b32.xlu1 %v1109_v3, %s1459_s25 }
 0x161   : > { %v1116_v14 = vpop.permute.xlu2 %1115 }
 0x169   : > { %v1128_v45 = vpop.permute.xlu2 %1127 }
 0x171   : > { %v1145_v54 = vpop.permute.xlu2 %1144 }
 0x179   : > { %v1136_v13 = vpop.permute.xlu2 %1135 }
 0x181   : > { %v1139_v18 = vpop.permute.xlu2 %1138 }
 0x1aa   : > { %v1168_v46 = vpop.permute.xlu0 %1167  ;;  %v1164_v49 = vpop.permute.xlu1 %1163 }
 0x1b2   : > { %v1122_v29 = vpop.permute.xlu0 %1121  ;;  %v1112_v16 = vpop.permute.xlu1 %1111 }
 0x1ba   : > { %v1132_v19 = vpop.permute.xlu0 %1131  ;;  %v1125_v17 = vpop.permute.xlu1 %1124 }
 0x1bb   : > { %v1153_v7 = vsel %vm173_vm0, %v1128_v45, %v1132_v19  ;;  %v1150_v5 = vsel %vm173_vm0, %v1122_v29, %v1125_v17 }
 0x1bc   : > { %v1154_v43 = vsel %vm175_vm1, %v1153_v7, %v1136_v13  ;;  %v1151_v1 = vsel %vm175_vm1, %v1150_v5, %v1889_v61  ;;  %v1147_v61 = vsel %vm173_vm0, %v1358_v41, %v1112_v16 }
 0x1bd   : > { %v1155_v23 = vsel %vm177_vm2, %v1154_v43, %v1139_v18  ;;  %v1152_v20 = vsel %vm177_vm2, %v1151_v1, %v337_v6  ;;  %v1148_v51 = vsel %vm175_vm1, %v1147_v61, %v1116_v14 }
 0x1be   : > { %1181 = vst [vmem:[%s133_s26 + $0x10] sm:$0xff] %v1155_v23 }
 0x1bf   : > { %1180 = vst [vmem:[%s133_s26 + $0x8] sm:$0xff] %v1152_v20 }
 0x1c2   : > { %v1160_v30 = vpop.permute.xlu0 %1159  ;;  %v1142_v22 = vpop.permute.xlu1 %1141 }
 0x1c3   : > { %v1156_v24 = vsel %vm173_vm0, %v1142_v22, %v1145_v54  ;;  %v1176_v27 = vsel %vm173_vm0, %v1160_v30, %v1164_v49 }
 0x1c4   : > { %v1157_v25 = vsel %vm175_vm1, %v1156_v24, %v1918_v40  ;;  %v1177_v31 = vsel %vm175_vm1, %v1176_v27, %v1168_v46 }
 0x1c5   : > { %v1158_v26 = vsel %vm177_vm2, %v1157_v25, %v1900_v21 }
 0x1c6   : > { %1182 = vst [vmem:[%s133_s26 + $0x18] sm:$0xff] %v1158_v26 }
 0x1ca   : > { %v1171_v34 = vpop.permute.xlu0 %1170  ;;  %v1119_v35 = vpop.permute.xlu1 %1118 }
 0x1cb   : > { %v1178_v37 = vsel %vm177_vm2, %v1177_v31, %v1171_v34  ;;  %v1149_v15 = vsel %vm177_vm2, %v1148_v51, %v1119_v35 }
 0x1cc   : > { %1183 = vst [vmem:[%s133_s26 + $0x20] sm:$0xff] %v1178_v37 }
 0x1cd   : > { %1179 = vst [vmem:[%s133_s26] sm:$0xff] %v1149_v15 }
 0x1d2   : > { %v1174_v21 = vpop.permute.xlu1 %1173 }
 0x1d3   : > { %1184 = vst.msk [vmem:[%s133_s26 + $0x28] sm:$0xff] %vm173_vm0, %v1174_v21 }
 0x1d4   : > { %1416 = shalt.err (!%p1413_p4)
}
 0x1d5   : > { %1304 = dma.vmem_to_hbm [thread:$0]  (%p1527_p11), %s1200_s2, 768, %s1202_s10, %s1186_s3  }
 0x1d6 PF: > { %s1213_s16 = sand.u32 1, %s1443_s6   ;;  %p2018_p7 = scmp.ge.s32.totalorder %s1455_s9, 2 }
 0x1d7   : > { %s1214_s22 = scalar_lea.sflag [#allocation4], %s1213_s16 }
 0x1d8   : > { %p1311_p5 = pnand %p2018_p7, %p1531_p12 }
 0x1da   : > { %p1312_p8 = pneg %p1311_p5 }
 0x1dc   : > { %1438 = dma.done.wait (%p1312_p8), %s1214_s22, 768  }
 0x1dd   : > { %1440 = vsyncadd (%p1312_p8), %s1214_s22, 4294966528  ;;  %p14_p10 = scmp.ge.s32.totalorder %s1502_s12, 4   ;;  %s2019_s6 = smov %s1447_s7 }
 0x1de   : > { %s2020_s7 = smov %s1451_s8  ;;  %s2021_s8 = smov %s1514_s15 }
 0x1df   : > { %s2022_s9 = smov %s1502_s12  ;;  %16 = sbr.rel (!%p14_p10) target bundleno = 5 (0x5), region = 69 }
 0x1e4   :  { %1220 = vsyncpa [#allocation3], 1 }
 0x1e5   :  { %1222 = vsyncpa [#allocation3 + $0x1], 1 }
 0x1e6   :  { %1223 = vsyncpa [#allocation4], 1 }
 0x1e7   :  { %1225 = vsyncpa [#allocation4 + $0x1], 1 }

</bundles_post_ra>
